<compile_context>
chip_gen: v7x
topology: tpu7x:2x2x1
jax: 0.10.0
libtpu: 0.0.40
codegen_flags: <defaults>
</compile_context>

<pallas_src>
import numpy as np
import jax
import jax.numpy as jnp
from jax import lax
from jax.experimental import pallas as pl
from jax.experimental.pallas import tpu as pltpu


def _round_up(n, m):
    return ((n + m - 1) // m) * m


def _pick_tile_chunks(total_chunks, max_chunks, prefer_two_plus=False):
    """Largest divisor of `total_chunks` that is <= max_chunks.

    If prefer_two_plus, also try to leave >= 2 tiles along this axis (so the
    'parallel' grid dimension can shard across both v7x TensorCores)."""
    max_chunks = max(1, min(max_chunks, total_chunks))
    limit = max_chunks
    if prefer_two_plus and total_chunks >= 2:
        limit = max(1, min(limit, total_chunks // 2))
    for c in range(limit, 0, -1):
        if total_chunks % c == 0:
            return c
    return 1


# ---------------------------------------------------------------------------
# Kernels
# ---------------------------------------------------------------------------

def _noisy_linear_train_kernel(x_ref, wmu_ref, wsig_ref, weps_ref, o_ref, acc_ref):
    k = pl.program_id(2)

    @pl.when(k == 0)
    def _():
        acc_ref[...] = jnp.zeros_like(acc_ref)

    # Effective noisy weight tile (tn, tk).  Elementwise math in f32 (v5e VPU
    # has no native bf16); only the MXU operand is cast back to the streaming
    # dtype.  With f32 streaming the casts are no-ops.
    w = (wmu_ref[...].astype(jnp.float32)
         + wsig_ref[...].astype(jnp.float32) * weps_ref[...].astype(jnp.float32)
         ).astype(x_ref.dtype)

    # NT-form contraction: x (tm, tk) · w (tn, tk) over K -> (tm, tn).
    # The MXU consumes the "transposed" weight directly, no XLU transpose.
    acc_ref[...] += lax.dot_general(
        x_ref[...], w,
        dimension_numbers=(((1,), (1,)), ((), ())),
        preferred_element_type=jnp.float32)

    @pl.when(k == pl.num_programs(2) - 1)
    def _():
        o_ref[...] = acc_ref[...].astype(o_ref.dtype)


def _noisy_linear_eval_kernel(x_ref, wmu_ref, o_ref, acc_ref):
    k = pl.program_id(2)

    @pl.when(k == 0)
    def _():
        acc_ref[...] = jnp.zeros_like(acc_ref)

    acc_ref[...] += lax.dot_general(
        x_ref[...], wmu_ref[...],
        dimension_numbers=(((1,), (1,)), ((), ())),
        preferred_element_type=jnp.float32)

    @pl.when(k == pl.num_programs(2) - 1)
    def _():
        o_ref[...] = acc_ref[...].astype(o_ref.dtype)


# ---------------------------------------------------------------------------
# Wrapper
# ---------------------------------------------------------------------------

def noisy_linear_forward(x, weight_mu, weight_sigma, weight_epsilon,
                         bias_mu, bias_sigma, bias_epsilon, *,
                         training=True, stream_dtype=jnp.bfloat16,
                         tm_max=512, tn_max=256, tk_max=2048):
    """x: (B, I) f32. weight_*: (O, I) f32 (PyTorch layout). bias_*: (O,) f32.
    Returns (B, O) f32.

    stream_dtype controls the HBM/MXU streaming precision of x and the weight
    arrays (default bf16; use jnp.float32 for exact PyTorch-f32 numerics)."""
    B, I = x.shape
    O = weight_mu.shape[0]

    # ---- tile sizes (divisors of the 128-padded extents; lane-dense output) ----
    tm = min(_round_up(tm_max, 8), _round_up(B, 8))
    On = _round_up(O, 128) // 128
    Kn = _round_up(I, 128) // 128
    tn = 128 * _pick_tile_chunks(On, tn_max // 128, prefer_two_plus=True)
    tk = 128 * _pick_tile_chunks(Kn, tk_max // 128)
    Op = On * 128
    Ip = Kn * 128
    Bp = _round_up(B, tm)

    # ---- zero-pad + cast operands (zeros along K contribute nothing) ----
    x_p = jnp.pad(x, ((0, Bp - B), (0, Ip - I))).astype(stream_dtype)
    wmu_p = jnp.pad(weight_mu, ((0, Op - O), (0, Ip - I))).astype(stream_dtype)

    grid = (Bp // tm, Op // tn, Ip // tk)
    gi, gj, _ = grid

    x_spec = pl.BlockSpec((tm, tk), lambda i, j, k: (i, k))
    w_spec = pl.BlockSpec((tn, tk), lambda i, j, k: (j, k))
    o_spec = pl.BlockSpec((tm, tn), lambda i, j, k: (i, j))

    out_shape = jax.ShapeDtypeStruct((Bp, Op), jnp.float32)
    compiler_params = pltpu.CompilerParams(
        dimension_semantics=("parallel", "parallel", "arbitrary"),
        vmem_limit_bytes=32 * 1024 * 1024,
    )

    elem = jnp.dtype(stream_dtype).itemsize
    n_w_streams = 3 if training else 1
    # bytes_accessed reflects re-reads: weights per batch tile, x per output tile.
    bytes_accessed = (n_w_streams * Op * Ip * elem * gi
                      + Bp * Ip * elem * gj
                      + Bp * Op * 4)
    cost = pl.CostEstimate(flops=2 * Bp * Op * Ip, transcendentals=0,
                           bytes_accessed=bytes_accessed)

    if training:
        wsig_p = jnp.pad(weight_sigma, ((0, Op - O), (0, Ip - I))).astype(stream_dtype)
        weps_p = jnp.pad(weight_epsilon, ((0, Op - O), (0, Ip - I))).astype(stream_dtype)

        y_p = pl.pallas_call(
            _noisy_linear_train_kernel,
            out_shape=out_shape,
            grid_spec=pltpu.PrefetchScalarGridSpec(
                num_scalar_prefetch=0,
                grid=grid,
                in_specs=[x_spec, w_spec, w_spec, w_spec],
                out_specs=o_spec,
                scratch_shapes=[pltpu.VMEM((tm, tn), jnp.float32)],
            ),
            compiler_params=compiler_params,
            cost_estimate=cost,
        )(x_p, wmu_p, wsig_p, weps_p)
        bias = bias_mu + bias_sigma * bias_epsilon
    else:
        y_p = pl.pallas_call(
            _noisy_linear_eval_kernel,
            out_shape=out_shape,
            grid_spec=pltpu.PrefetchScalarGridSpec(
                num_scalar_prefetch=0,
                grid=grid,
                in_specs=[x_spec, w_spec],
                out_specs=o_spec,
                scratch_shapes=[pltpu.VMEM((tm, tn), jnp.float32)],
            ),
            compiler_params=compiler_params,
            cost_estimate=cost,
        )(x_p, wmu_p)
        bias = bias_mu

    # Bias added on the unpadded slice; XLA fuses this with the slice (keeps the
    # O(B*O) epilogue out of the kernel and frees three VMEM bias streams).
    return y_p[:B, :O] + bias[None, :]


# ---------------------------------------------------------------------------
# Pure-JAX references (for correctness checks)
# ---------------------------------------------------------------------------

def _ref_forward_f32(x, p, training):
    if training:
        w = p["weight_mu"] + p["weight_sigma"] * p["weight_epsilon"]
        b = p["bias_mu"] + p["bias_sigma"] * p["bias_epsilon"]
    else:
        w = p["weight_mu"]
        b = p["bias_mu"]
    return jnp.matmul(x, w.T, precision=lax.Precision.HIGHEST) + b


def _ref_forward_streamed(x, p, training, stream_dtype):
    """Emulates exactly what the kernel computes: stream-dtype cast of x and the
    weight arrays, f32 elementwise noisy-weight math, stream-dtype MXU operands,
    f32 accumulation, f32 bias."""
    sd = stream_dtype
    x_s = x.astype(sd).astype(jnp.float32)
    if training:
        w = (p["weight_mu"].astype(sd).astype(jnp.float32)
             + p["weight_sigma"].astype(sd).astype(jnp.float32)
             * p["weight_epsilon"].astype(sd).astype(jnp.float32))
        w = w.astype(sd).astype(jnp.float32)
        b = p["bias_mu"] + p["bias_sigma"] * p["bias_epsilon"]
    else:
        w = p["weight_mu"].astype(sd).astype(jnp.float32)
        b = p["bias_mu"]
    return jnp.matmul(x_s, w.T, precision=lax.Precision.HIGHEST) + b


# ---------------------------------------------------------------------------
# Host-side parameter / noise init mirroring NoisyLinear.__init__ +
# reset_parameters() + reset_noise(noise_dist='gamma')
# ---------------------------------------------------------------------------

def init_noisy_linear_params(key, in_features, out_features, std_init=0.1):
    k_w, k_b, k_g1, k_g2 = jax.random.split(key, 4)

    # xavier_normal_(weight_mu, gain=0.1): std = gain * sqrt(2/(fan_in+fan_out))
    xavier_std = 0.1 * np.sqrt(2.0 / (in_features + out_features))
    weight_mu = xavier_std * jax.random.normal(
        k_w, (out_features, in_features), dtype=jnp.float32)

    # uniform_(bias_mu, -0.01, 0.01)
    bias_mu = jax.random.uniform(
        k_b, (out_features,), dtype=jnp.float32, minval=-0.01, maxval=0.01)

    # The reference module divides by sqrt(in_features) twice (once in __init__,
    # once in reset_parameters) -> sigma = std_init / in_features. Intentional.
    sigma_val = (std_init / np.sqrt(in_features)) / np.sqrt(in_features)
    weight_sigma = jnp.full((out_features, in_features), sigma_val, jnp.float32)
    bias_sigma = jnp.full((out_features,), sigma_val, jnp.float32)

    # gamma noise: (Gamma(2,1) - Gamma(2,1)) / 2, clamped to [-1, 1]; bias noise
    # from weight-noise row means, exactly as in reset_noise().
    g1 = jax.random.gamma(k_g1, 2.0, (out_features, in_features)).astype(jnp.float32)
    g2 = jax.random.gamma(k_g2, 2.0, (out_features, in_features)).astype(jnp.float32)
    weight_epsilon = jnp.clip((g1 - g2) / 2.0, -1.0, 1.0)
    bias_epsilon = jnp.clip((g1.mean(axis=1) - g2.mean(axis=1)) / 2.0, -1.0, 1.0)

    return dict(weight_mu=weight_mu, weight_sigma=weight_sigma,
                weight_epsilon=weight_epsilon, bias_mu=bias_mu,
                bias_sigma=bias_sigma, bias_epsilon=bias_epsilon)


if __name__ == "__main__":
    key = jax.random.PRNGKey(0)
    k_x, k_p = jax.random.split(key)

    # --- small demo shape (matches the TD3 test scale) ---
    batch, in_features, out_features = 2, 32, 16
    x = jax.random.normal(k_x, (batch, in_features), dtype=jnp.float32)
    params = init_noisy_linear_params(k_p, in_features, out_features)
    args = (x, params["weight_mu"], params["weight_sigma"], params["weight_epsilon"],
            params["bias_mu"], params["bias_sigma"], params["bias_epsilon"])

    # bf16-streamed training forward (default path) — check against an exact
    # emulation of the streamed computation, plus a loose check vs pure f32.
    y_bf16 = jax.block_until_ready(noisy_linear_forward(*args, training=True))
    np.testing.assert_allclose(
        np.asarray(y_bf16),
        np.asarray(_ref_forward_streamed(x, params, True, jnp.bfloat16)),
        rtol=1e-4, atol=1e-4)
    np.testing.assert_allclose(
        np.asarray(y_bf16), np.asarray(_ref_forward_f32(x, params, True)),
        rtol=5e-2, atol=5e-3)

    # f32-streamed training forward — exact PyTorch-f32 semantics.
    y_f32 = jax.block_until_ready(noisy_linear_forward(
        *args, training=True, stream_dtype=jnp.float32))
    np.testing.assert_allclose(
        np.asarray(y_f32), np.asarray(_ref_forward_f32(x, params, True)),
        rtol=1e-5, atol=1e-5)

    # eval-mode (no noise) path.
    y_eval = jax.block_until_ready(noisy_linear_forward(*args, training=False))
    np.testing.assert_allclose(
        np.asarray(y_eval),
        np.asarray(_ref_forward_streamed(x, params, False, jnp.bfloat16)),
        rtol=1e-4, atol=1e-4)

    # --- larger shape: one batch tile, 3 output tiles, single K step ---
    B2, I2, O2 = 48, 640, 320
    kx2, kp2 = jax.random.split(jax.random.PRNGKey(1))
    x2 = jax.random.normal(kx2, (B2, I2), dtype=jnp.float32)
    p2 = init_noisy_linear_params(kp2, I2, O2)
    args2 = (x2, p2["weight_mu"], p2["weight_sigma"], p2["weight_epsilon"],
             p2["bias_mu"], p2["bias_sigma"], p2["bias_epsilon"])
    y2 = jax.block_until_ready(noisy_linear_forward(*args2, training=True))
    np.testing.assert_allclose(
        np.asarray(y2),
        np.asarray(_ref_forward_streamed(x2, p2, True, jnp.bfloat16)),
        rtol=1e-4, atol=1e-4)
    np.testing.assert_allclose(
        np.asarray(y2), np.asarray(_ref_forward_f32(x2, p2, True)),
        rtol=5e-2, atol=1e-2)

    # --- force a multi-tile (3, 3, 5) grid in f32 to exercise the accumulator
    #     init/finalize path with exact numerics ---
    y2_multi = jax.block_until_ready(noisy_linear_forward(
        *args2, training=True, stream_dtype=jnp.float32,
        tm_max=16, tn_max=128, tk_max=256))
    np.testing.assert_allclose(
        np.asarray(y2_multi), np.asarray(_ref_forward_f32(x2, p2, True)),
        rtol=1e-4, atol=1e-4)

    print("KERNEL_OK")
</pallas_src>

<mosaic_0001>
module attributes {stable_mosaic.version = 11 : i64} {
  func.func @_noisy_linear_train_kernel(%arg0: i32, %arg1: i32, %arg2: i32, %arg3: memref<8x128xbf16, #tpu.memory_space<vmem>>, %arg4: memref<128x128xbf16, #tpu.memory_space<vmem>>, %arg5: memref<128x128xbf16, #tpu.memory_space<vmem>>, %arg6: memref<128x128xbf16, #tpu.memory_space<vmem>>, %arg7: memref<8x128xf32, #tpu.memory_space<vmem>>, %arg8: memref<8x128xf32, #tpu.memory_space<vmem>>) attributes {dimension_semantics = [#tpu.dimension_semantics<parallel>, #tpu.dimension_semantics<parallel>, #tpu.dimension_semantics<arbitrary>], iteration_bounds = array<i64: 1, 1, 1>, scalar_prefetch = 0 : i64, scratch_operands = 1 : i64, tpu.core_type = #tpu.core_type<tc>, window_params = [{transform_indices = @transform_0, window_bounds = array<i64: 8, 128>}, {transform_indices = @transform_1, window_bounds = array<i64: 128, 128>}, {transform_indices = @transform_2, window_bounds = array<i64: 128, 128>}, {transform_indices = @transform_3, window_bounds = array<i64: 128, 128>}, {transform_indices = @transform_4, window_bounds = array<i64: 8, 128>}]} {
    %c0_i32 = arith.constant 0 : i32
    %0 = arith.cmpi eq, %arg2, %c0_i32 : i32
    %1 = arith.extui %0 : i1 to i32
    %c0_i32_0 = arith.constant 0 : i32
    %2 = arith.cmpi ne, %1, %c0_i32_0 : i32
    scf.if %2 {
      %cst_14 = arith.constant 0.000000e+00 : f32
      %20 = vector.broadcast %cst_14 : f32 to vector<8x128xf32>
      %c0_15 = arith.constant 0 : index
      %c0_16 = arith.constant 0 : index
      %21 = vector.load %arg8[%c0_15, %c0_16] : memref<8x128xf32, #tpu.memory_space<vmem>>, vector<8x128xf32>
      tpu.vector_store %arg8[%c0_15, %c0_16], %20 {strides = array<i32>} : memref<8x128xf32, #tpu.memory_space<vmem>>, vector<8x128xf32>,
    } else {
    }
    %c0 = arith.constant 0 : index
    %c0_1 = arith.constant 0 : index
    %3 = vector.load %arg4[%c0, %c0_1] : memref<128x128xbf16, #tpu.memory_space<vmem>>, vector<128x128xbf16>
    %4 = arith.extf %3 : vector<128x128xbf16> to vector<128x128xf32>
    %c0_2 = arith.constant 0 : index
    %c0_3 = arith.constant 0 : index
    %5 = vector.load %arg5[%c0_2, %c0_3] : memref<128x128xbf16, #tpu.memory_space<vmem>>, vector<128x128xbf16>
    %6 = arith.extf %5 : vector<128x128xbf16> to vector<128x128xf32>
    %c0_4 = arith.constant 0 : index
    %c0_5 = arith.constant 0 : index
    %7 = vector.load %arg6[%c0_4, %c0_5] : memref<128x128xbf16, #tpu.memory_space<vmem>>, vector<128x128xbf16>
    %8 = arith.extf %7 : vector<128x128xbf16> to vector<128x128xf32>
    %9 = arith.mulf %6, %8 : vector<128x128xf32>
    %10 = arith.addf %4, %9 : vector<128x128xf32>
    %11 = arith.truncf %10 : vector<128x128xf32> to vector<128x128xbf16>
    %c0_6 = arith.constant 0 : index
    %c0_7 = arith.constant 0 : index
    %12 = vector.load %arg8[%c0_6, %c0_7] : memref<8x128xf32, #tpu.memory_space<vmem>>, vector<8x128xf32>
    %c0_8 = arith.constant 0 : index
    %c0_9 = arith.constant 0 : index
    %13 = vector.load %arg3[%c0_8, %c0_9] : memref<8x128xbf16, #tpu.memory_space<vmem>>, vector<8x128xbf16>
    %cst = arith.constant dense<0.000000e+00> : vector<8x128xf32>
    %14 = tpu.matmul %13, %11, %cst {dimension_numbers = #tpu.dot_dimension_numbers<[1], [1], [0], [0], [0, 0, 1, 0], [], []>} : vector<8x128xbf16>, vector<128x128xbf16>, vector<8x128xf32> -> vector<8x128xf32>
    %15 = arith.addf %12, %14 : vector<8x128xf32>
    %c0_10 = arith.constant 0 : index
    %c0_11 = arith.constant 0 : index
    %16 = vector.load %arg8[%c0_10, %c0_11] : memref<8x128xf32, #tpu.memory_space<vmem>>, vector<8x128xf32>
    tpu.vector_store %arg8[%c0_10, %c0_11], %15 {strides = array<i32>} : memref<8x128xf32, #tpu.memory_space<vmem>>, vector<8x128xf32>,
    %c0_i32_12 = arith.constant 0 : i32
    %17 = arith.cmpi eq, %arg2, %c0_i32_12 : i32
    %18 = arith.extui %17 : i1 to i32
    %c0_i32_13 = arith.constant 0 : i32
    %19 = arith.cmpi ne, %18, %c0_i32_13 : i32
    scf.if %19 {
      %c0_14 = arith.constant 0 : index
      %c0_15 = arith.constant 0 : index
      %20 = vector.load %arg8[%c0_14, %c0_15] : memref<8x128xf32, #tpu.memory_space<vmem>>, vector<8x128xf32>
      %c0_16 = arith.constant 0 : index
      %c0_17 = arith.constant 0 : index
      %21 = vector.load %arg7[%c0_16, %c0_17] : memref<8x128xf32, #tpu.memory_space<vmem>>, vector<8x128xf32>
      tpu.vector_store %arg7[%c0_16, %c0_17], %20 {strides = array<i32>} : memref<8x128xf32, #tpu.memory_space<vmem>>, vector<8x128xf32>,
    } else {
    }
    return
  }
  func.func @transform_0(%arg0: i32, %arg1: i32, %arg2: i32) -> (i32, i32) {
    %c0_i32 = arith.constant 0 : i32
    return %arg0, %arg2 : i32, i32
  }
  func.func @transform_1(%arg0: i32, %arg1: i32, %arg2: i32) -> (i32, i32) {
    %c0_i32 = arith.constant 0 : i32
    return %arg1, %arg2 : i32, i32
  }
  func.func @transform_2(%arg0: i32, %arg1: i32, %arg2: i32) -> (i32, i32) {
    %c0_i32 = arith.constant 0 : i32
    return %arg1, %arg2 : i32, i32
  }
  func.func @transform_3(%arg0: i32, %arg1: i32, %arg2: i32) -> (i32, i32) {
    %c0_i32 = arith.constant 0 : i32
    return %arg1, %arg2 : i32, i32
  }
  func.func @transform_4(%arg0: i32, %arg1: i32, %arg2: i32) -> (i32, i32) {
    %c0_i32 = arith.constant 0 : i32
    return %arg0, %arg1 : i32, i32
  }
}

</mosaic_0001>

<bundles_post_ra>
// kernel: tpu_custom_call.1
= control target key start
LH: loop header
LB: loop body
LE: loop exit
PB: predicated region body
PF: predicated region fallthrough
CT: control target
= control target key end

     0   :  { %9 = vsyncpa [#allocation4], 0  ;;  %s664_s0 = inlined_call_operand.hbm [shape: bf16[8,128], index: 0, kind: input, shape index: {}]   ;;  %s665_s1 = inlined_call_operand.hbm [shape: bf16[128,128], index: 1, kind: input, shape index: {}]   ;;  %s666_s2 = inlined_call_operand.hbm [shape: bf16[128,128], index: 2, kind: input, shape index: {}]   ;;  %s667_s3 = inlined_call_operand.hbm [shape: bf16[128,128], index: 3, kind: input, shape index: {}]   ;;  %s668_s4 = inlined_call_operand.hbm [shape: f32[8,128], index: 4, kind: output, shape index: {}]  }
   0x1   :  { %10 = vsyncpa [#allocation7], 0 }
   0x2   :  { %11 = vsyncpa [#allocation10], 0 }
   0x3   :  { %12 = vsyncpa [#allocation5], 0  ;;  %s552_s15 = smov [#allocation6]   ;;  %s434_s19 = scalar_lea.hbm %s665_s1, 1024 }
   0x4   :  { %s28_s16 = sshll.u32 %s552_s15, 4  ;;  %p435_p0 = scmp.ne.s32.totalorder %s665_s1, %s434_s19  ;;  %s29_s16 = int_to_ptr.vmem [resolvable:$true] %s28_s16 }
   0x5   :  { %p438_p1 = scmp.lt.u32.totalorder %s434_s19, %s665_s1 }
   0x7   :  { %p440_p2 = pnand %p438_p1, %p435_p0 }
   0x9   :  { %443 = shalt.err (!%p440_p2)
}
   0xa   :  { %s444_s24 = scalar_lea.vmem %s29_s16, 1024  ;;  %p449_p4 = scmp.lt.s32.totalorder %s29_s16, %s29_s16 }
   0xb   :  { %p445_p3 = scmp.ne.s32.totalorder %s29_s16, %s444_s24  ;;  %p450_p5 = scmp.lt.s32.totalorder %s444_s24, %s444_s24 }
   0xd   :  { %p451_p6 = por %p450_p5, %p449_p4 }
   0xf   :  { %p452_p7 = pnand %p451_p6, %p445_p3 }
  0x11   :  { %455 = shalt.err (!%p452_p7)
}
  0x12   :  { %s553_s25 = smov 64   ;;  %s554_s26 = smov 4  }
  0x13   :  { %34 = dma.hbm_to_vmem [thread:$0]  %s665_s1, 1024, %s29_s16, [#allocation7], %s553_s25, %s553_s25, %s554_s26  }
  0x14   :  { %s555_s29 = smov [#allocation3]   ;;  %s556_s5 = smov [#allocation8]  }
  0x15   :  { %s19_s30 = sshll.u32 %s555_s29, 4  ;;  %s40_s6 = sshll.u32 %s556_s5, 4  ;;  %s20_s30 = int_to_ptr.vmem [resolvable:$true] %s19_s30  ;;  %s41_s6 = int_to_ptr.vmem [resolvable:$true] %s40_s6 }
  0x16   :  { %s456_s9 = scalar_lea.hbm %s664_s0, 64 }
  0x17   :  { %p457_p8 = scmp.ne.s32.totalorder %s664_s0, %s456_s9  ;;  %p460_p9 = scmp.lt.u32.totalorder %s456_s9, %s664_s0 }
  0x19   :  { %p462_p10 = pnand %p460_p9, %p457_p8 }
  0x1b   :  { %465 = shalt.err (!%p462_p10)
}
  0x1c   :  { %s466_s1 = scalar_lea.vmem %s20_s30, 64  ;;  %p471_p12 = scmp.lt.s32.totalorder %s20_s30, %s20_s30 }
  0x1d   :  { %p467_p11 = scmp.ne.s32.totalorder %s20_s30, %s466_s1  ;;  %p472_p13 = scmp.lt.s32.totalorder %s466_s1, %s466_s1 }
  0x1f   :  { %p473_p0 = por %p472_p13, %p471_p12 }
  0x21   :  { %p474_p1 = pnand %p473_p0, %p467_p11 }
  0x23   :  { %477 = shalt.err (!%p474_p1)
}
  0x24   :  { %22 = dma.hbm_to_vmem [thread:$0]  %s664_s0, 64, %s20_s30, [#allocation4]  }
  0x25   :  { %s478_s18 = scalar_lea.hbm %s666_s2, 1024 }
  0x26   :  { %p479_p2 = scmp.ne.s32.totalorder %s666_s2, %s478_s18  ;;  %p482_p3 = scmp.lt.u32.totalorder %s478_s18, %s666_s2 }
  0x28   :  { %p484_p4 = pnand %p482_p3, %p479_p2 }
  0x2a   :  { %487 = shalt.err (!%p484_p4)
}
  0x2b   :  { %s488_s23 = scalar_lea.vmem %s41_s6, 1024  ;;  %p493_p6 = scmp.lt.s32.totalorder %s41_s6, %s41_s6 }
  0x2c   :  { %p489_p5 = scmp.ne.s32.totalorder %s41_s6, %s488_s23  ;;  %p494_p7 = scmp.lt.s32.totalorder %s488_s23, %s488_s23 }
  0x2e   :  { %p495_p8 = por %p494_p7, %p493_p6 }
  0x30   :  { %p496_p9 = pnand %p495_p8, %p489_p5 }
  0x32   :  { %499 = shalt.err (!%p496_p9)
}
  0x33   :  { %46 = dma.hbm_to_vmem [thread:$0]  %s666_s2, 1024, %s41_s6, [#allocation7], %s553_s25, %s553_s25, %s554_s26  }
  0x34   :  { %s557_s27 = smov [#allocation9]   ;;  %s500_s5 = scalar_lea.hbm %s667_s3, 1024 }
  0x35   :  { %s52_s28 = sshll.u32 %s557_s27, 4  ;;  %p501_p10 = scmp.ne.s32.totalorder %s667_s3, %s500_s5  ;;  %s53_s28 = int_to_ptr.vmem [resolvable:$true] %s52_s28 }
  0x36   :  { %p504_p11 = scmp.lt.u32.totalorder %s500_s5, %s667_s3 }
  0x38   :  { %p506_p12 = pnand %p504_p11, %p501_p10 }
  0x3a   :  { %509 = shalt.err (!%p506_p12)
}
  0x3b   :  { %s510_s11 = scalar_lea.vmem %s53_s28, 1024  ;;  %p515_p0 = scmp.lt.s32.totalorder %s53_s28, %s53_s28 }
  0x3c   :  { %p511_p13 = scmp.ne.s32.totalorder %s53_s28, %s510_s11  ;;  %p516_p1 = scmp.lt.s32.totalorder %s510_s11, %s510_s11 }
  0x3e   :  { %p517_p2 = por %p516_p1, %p515_p0 }
  0x40   :  { %p518_p3 = pnand %p517_p2, %p511_p13 }
  0x42   :  { %521 = shalt.err (!%p518_p3)
}
  0x43   :  { %58 = dma.hbm_to_vmem [thread:$0]  %s667_s3, 1024, %s53_s28, [#allocation10], %s553_s25, %s553_s25, %s554_s26  }
  0x44   :  { %544 = dma.done.wait [#allocation4], 64  }
  0x45   :  { %545 = vsyncadd [#allocation4], 4294967232 }
  0x46   :  { %546 = dma.done.wait [#allocation7], 2048  }
  0x47   :  { %547 = vsyncadd [#allocation7], 4294965248 }
  0x48   :  { %548 = dma.done.wait [#allocation10], 1024  }
  0x49   :  { %549 = vsyncadd [#allocation10], 4294966272  ;;  %v558_v0 = vmov 0.0   ;;  %vm559_vm0 = vmmov 0   ;;  %v280_v1 = vld [vmem:[#allocation6] sm:$0xff]   ;;  %v382_v6 = vld [vmem:[#allocation8 + $0x8] sm:$0xff]  }
  0x4a   :  { %405 = vmatprep.subr.bf16.mxu0 %v558_v0  ;;  %421 = vmatprep.mubr.msk.bf16.mxu0 %vm559_vm0, %v558_v0  ;;  %v312_v2 = vld [vmem:[#allocation8] sm:$0xff]   ;;  %v389_v7 = vld [vmem:[#allocation9 + $0x8] sm:$0xff]   ;;  %v281_v8 = vunpack.c.l.bf16 %v280_v1  ;;  %v282_v9 = vunpack.c.h.bf16 %v280_v1  ;;  %v317_v13 = vunpack.c.l.bf16 %v382_v6  ;;  %v318_v14 = vunpack.c.h.bf16 %v382_v6  ;;  %v383_v25 = vld [vmem:[#allocation8 + $0x10] sm:$0xff]   ;;  %s560_s3 = smov [#allocation11]  }
  0x4b   :  { %v344_v3 = vld [vmem:[#allocation9] sm:$0xff]   ;;  %v313_v4 = vunpack.c.l.bf16 %v312_v2  ;;  %v314_v5 = vunpack.c.h.bf16 %v312_v2  ;;  %v375_v12 = vld [vmem:[#allocation6 + $0x8] sm:$0xff]   ;;  %v349_v15 = vunpack.c.l.bf16 %v389_v7  ;;  %v350_v16 = vunpack.c.h.bf16 %v389_v7  ;;  %v390_v26 = vld [vmem:[#allocation9 + $0x10] sm:$0xff]   ;;  %s268_s25 = sshll.u32 %s560_s3, 4  ;;  %s269_s25 = int_to_ptr.vmem [resolvable:$true] %s268_s25 }
  0x4c   :  { %v345_v10 = vunpack.c.l.bf16 %v344_v3  ;;  %v346_v11 = vunpack.c.h.bf16 %v344_v3  ;;  %v285_v19 = vunpack.c.l.bf16 %v375_v12  ;;  %v286_v20 = vunpack.c.h.bf16 %v375_v12  ;;  %v376_v32 = vld [vmem:[#allocation6 + $0x10] sm:$0xff]   ;;  %v384_v40 = vld [vmem:[#allocation8 + $0x18] sm:$0xff]   ;;  %v385_v54 = vld [vmem:[#allocation8 + $0x20] sm:$0xff]   ;;  %s522_s26 = scalar_lea.vmem %s269_s25, 128  ;;  %p527_p5 = scmp.lt.s32.totalorder %s269_s25, %s269_s25 }
  0x4d   :  { %v175_v23 = vmul.f32 %v349_v15, %v317_v13  ;;  %v176_v24 = vmul.f32 %v350_v16, %v318_v14  ;;  %v321_v28 = vunpack.c.l.bf16 %v383_v25  ;;  %v322_v29 = vunpack.c.h.bf16 %v383_v25  ;;  %v391_v41 = vld [vmem:[#allocation9 + $0x18] sm:$0xff]   ;;  %v392_v55 = vld [vmem:[#allocation9 + $0x20] sm:$0xff]   ;;  %v393_v6 = vld [vmem:[#allocation9 + $0x28] sm:$0xff]   ;;  %p523_p4 = scmp.ne.s32.totalorder %s269_s25, %s522_s26  ;;  %p528_p6 = scmp.lt.s32.totalorder %s522_s26, %s522_s26 }
  0x4e   :  { %v173_v17 = vmul.f32 %v345_v10, %v313_v4  ;;  %v174_v18 = vmul.f32 %v346_v11, %v314_v5  ;;  %v353_v33 = vunpack.c.l.bf16 %v390_v26  ;;  %v354_v34 = vunpack.c.h.bf16 %v390_v26  ;;  %v377_v46 = vld [vmem:[#allocation6 + $0x18] sm:$0xff]   ;;  %v378_v60 = vld [vmem:[#allocation6 + $0x20] sm:$0xff]   ;;  %v386_v5 = vld [vmem:[#allocation8 + $0x28] sm:$0xff]  }
  0x4f   :  { %v191_v30 = vadd.f32 %v285_v19, %v175_v23  ;;  %v192_v31 = vadd.f32 %v286_v20, %v176_v24  ;;  %v289_v35 = vunpack.c.l.bf16 %v376_v32  ;;  %v290_v37 = vunpack.c.h.bf16 %v376_v32  ;;  %v379_v11 = vld [vmem:[#allocation6 + $0x28] sm:$0xff]   ;;  %v387_v19 = vld [vmem:[#allocation8 + $0x30] sm:$0xff]   ;;  %p529_p7 = por %p528_p6, %p527_p5 }
  0x50   :  { %v189_v21 = vadd.f32 %v281_v8, %v173_v17  ;;  %v190_v22 = vadd.f32 %v282_v9, %v174_v18  ;;  %v177_v38 = vmul.f32 %v353_v33, %v321_v28  ;;  %v178_v39 = vmul.f32 %v354_v34, %v322_v29  ;;  %v394_v20 = vld [vmem:[#allocation9 + $0x30] sm:$0xff]   ;;  %v388_v33 = vld [vmem:[#allocation8 + $0x38] sm:$0xff]  }
  0x51   :  { %v206_v36 = vpack.c.bf16 %v192_v31, %v191_v30  ;;  %v325_v42 = vunpack.c.l.bf16 %v384_v40  ;;  %v326_v43 = vunpack.c.h.bf16 %v384_v40  ;;  %v357_v47 = vunpack.c.l.bf16 %v391_v41  ;;  %v380_v25 = vld [vmem:[#allocation6 + $0x30] sm:$0xff]   ;;  %v395_v34 = vld [vmem:[#allocation9 + $0x38] sm:$0xff]   ;;  %p530_p8 = pnand %p529_p7, %p523_p4 }
  0x52   :  { %v205_v27 = vpack.c.bf16 %v190_v22, %v189_v21  ;;  %v193_v44 = vadd.f32 %v289_v35, %v177_v38  ;;  %v194_v45 = vadd.f32 %v290_v37, %v178_v39  ;;  %v358_v48 = vunpack.c.h.bf16 %v391_v41  ;;  %v381_v39 = vld [vmem:[#allocation6 + $0x38] sm:$0xff]  }
  0x53   :  { %v293_v49 = vunpack.c.l.bf16 %v377_v46  ;;  %v294_v51 = vunpack.c.h.bf16 %v377_v46  ;;  %v179_v52 = vmul.f32 %v357_v47, %v325_v42  ;;  %v329_v56 = vunpack.c.l.bf16 %v385_v54 }
  0x54   :  { %406 = vmatpush3.bf16.xpose.msra.mxu0 %v205_v27  ;;  %v207_v50 = vpack.c.bf16 %v194_v45, %v193_v44  ;;  %v180_v53 = vmul.f32 %v358_v48, %v326_v43  ;;  %v330_v57 = vunpack.c.h.bf16 %v385_v54  ;;  %v361_v61 = vunpack.c.l.bf16 %v392_v55 }
  0x55   :  { %407 = vmatprep.subr.bf16.mxu0 %v558_v0  ;;  %v195_v58 = vadd.f32 %v293_v49, %v179_v52  ;;  %v362_v62 = vunpack.c.h.bf16 %v392_v55  ;;  %v297_v63 = vunpack.c.l.bf16 %v378_v60  ;;  %v298_v2 = vunpack.c.h.bf16 %v378_v60 }
  0x56   :  { %v196_v59 = vadd.f32 %v294_v51, %v180_v53  ;;  %v181_v3 = vmul.f32 %v361_v61, %v329_v56  ;;  %v333_v7 = vunpack.c.l.bf16 %v386_v5  ;;  %v334_v8 = vunpack.c.h.bf16 %v386_v5 }
  0x57   :  { %v182_v4 = vmul.f32 %v362_v62, %v330_v57  ;;  %v365_v12 = vunpack.c.l.bf16 %v393_v6  ;;  %v366_v13 = vunpack.c.h.bf16 %v393_v6  ;;  %v301_v14 = vunpack.c.l.bf16 %v379_v11 }
  0x58   :  { %v208_v1 = vpack.c.bf16 %v196_v59, %v195_v58  ;;  %v197_v9 = vadd.f32 %v297_v63, %v181_v3  ;;  %v302_v16 = vunpack.c.h.bf16 %v379_v11  ;;  %v337_v21 = vunpack.c.l.bf16 %v387_v19 }
  0x59   :  { %v198_v10 = vadd.f32 %v298_v2, %v182_v4  ;;  %v183_v17 = vmul.f32 %v365_v12, %v333_v7  ;;  %v184_v18 = vmul.f32 %v366_v13, %v334_v8  ;;  %v338_v22 = vunpack.c.h.bf16 %v387_v19 }
  0x5a   :  { %v369_v26 = vunpack.c.l.bf16 %v394_v20  ;;  %v370_v27 = vunpack.c.h.bf16 %v394_v20  ;;  %v305_v28 = vunpack.c.l.bf16 %v380_v25  ;;  %v306_v30 = vunpack.c.h.bf16 %v380_v25 }
  0x5b   :  { %v209_v15 = vpack.c.bf16 %v198_v10, %v197_v9  ;;  %v199_v23 = vadd.f32 %v301_v14, %v183_v17  ;;  %v200_v24 = vadd.f32 %v302_v16, %v184_v18  ;;  %v341_v35 = vunpack.c.l.bf16 %v388_v33 }
  0x5c   :  { %408 = vmatpush3.bf16.xpose.msra.mxu0 %v206_v36  ;;  %v185_v31 = vmul.f32 %v369_v26, %v337_v21  ;;  %v186_v32 = vmul.f32 %v370_v27, %v338_v22  ;;  %v342_v36 = vunpack.c.h.bf16 %v388_v33  ;;  %v373_v40 = vunpack.c.l.bf16 %v395_v34 }
  0x5d   :  { %409 = vmatprep.subr.bf16.mxu0 %v558_v0  ;;  %v210_v29 = vpack.c.bf16 %v200_v24, %v199_v23  ;;  %v374_v41 = vunpack.c.h.bf16 %v395_v34  ;;  %v309_v42 = vunpack.c.l.bf16 %v381_v39  ;;  %v310_v44 = vunpack.c.h.bf16 %v381_v39 }
  0x5e   :  { %v201_v37 = vadd.f32 %v305_v28, %v185_v31  ;;  %v202_v38 = vadd.f32 %v306_v30, %v186_v32  ;;  %v187_v45 = vmul.f32 %v373_v40, %v341_v35 }
  0x5f   :  { %v188_v46 = vmul.f32 %v374_v41, %v342_v36 }
  0x60   :  { %v211_v43 = vpack.c.bf16 %v202_v38, %v201_v37  ;;  %v203_v47 = vadd.f32 %v309_v42, %v187_v45 }
  0x61   :  { %v204_v48 = vadd.f32 %v310_v44, %v188_v46 }
  0x63   :  { %v212_v49 = vpack.c.bf16 %v204_v48, %v203_v47 }
  0x64   :  { %410 = vmatpush3.bf16.xpose.msra.mxu0 %v207_v50  ;;  %v214_v50 = vld [vmem:[#allocation3] sm:$0xf] }
  0x65   :  { %411 = vmatprep.subr.bf16.mxu0 %v558_v0 }
  0x6c   :  { %412 = vmatpush3.bf16.xpose.msra.mxu0 %v208_v1 }
  0x6d   :  { %413 = vmatprep.subr.bf16.mxu0 %v558_v0 }
  0x74   :  { %414 = vmatpush3.bf16.xpose.msra.mxu0 %v209_v15 }
  0x75   :  { %415 = vmatprep.subr.bf16.mxu0 %v558_v0 }
  0x7c   :  { %416 = vmatpush3.bf16.xpose.msra.mxu0 %v210_v29 }
  0x7d   :  { %417 = vmatprep.subr.bf16.mxu0 %v558_v0 }
  0x84   :  { %418 = vmatpush3.bf16.xpose.msra.mxu0 %v211_v43 }
  0x85   :  { %419 = vmatprep.subr.bf16.mxu0 %v558_v0 }
  0x8c   :  { %420 = vmatpush3.bf16.xpose.msra.mxu0 %v212_v49 }
  0x93   :  { %422 = vmatmul.mubr.bf16.vlgmr.msra.gmra.mrb[0].mxu0 %v214_v50 }
 0x166   :  { %v249_v51 = vpop.f32.mrb[0].mxu0 }
 0x167   :  { %261 = vst [vmem:[#allocation11] sm:$0xff] %v249_v51  ;;  %v423_v52 = vpop.f32.mrb[1].mxu0 }
 0x168   :  { %v252_v53 = vpop.f32.mrb[2].mxu0 }
 0x169   :  { %533 = shalt.err (!%p530_p8)
}
 0x16a   :  { %s534_s1 = scalar_lea.hbm %s668_s4, 128 }
 0x16b   :  { %p535_p9 = scmp.ne.s32.totalorder %s668_s4, %s534_s1  ;;  %p538_p10 = scmp.lt.u32.totalorder %s534_s1, %s668_s4 }
 0x16d   :  { %p540_p11 = pnand %p538_p10, %p535_p9 }
 0x16f   :  { %543 = shalt.err (!%p540_p11)
}
 0x170   :  { %271 = dma.vmem_to_hbm [thread:$0]  %s269_s25, 128, %s668_s4, [#allocation5]   ;;  %v424_v0 = vpop.f32.mrb[3].mxu0 }
 0x171   :  { %550 = dma.done.wait [#allocation5], 128  }
 0x172   :  { %551 = vsyncadd [#allocation5], 4294967168 }
 0x173   :  { %275 = vsyncpa [#allocation4], 1 }
 0x174   :  { %276 = vsyncpa [#allocation7], 1 }
 0x175   :  { %277 = vsyncpa [#allocation10], 1 }
 0x176   :  { %278 = vsyncpa [#allocation5], 1 }

</bundles_post_ra>
